<compile_context>
chip_gen: v7x
topology: tpu7x:2x2x1
jax: 0.10.0
libtpu: 0.0.40
codegen_flags: <defaults>
</compile_context>

<pallas_src>
import functools

import jax
import jax.numpy as jnp
from jax import lax
from jax.experimental import pallas as pl
from jax.experimental.pallas import tpu as pltpu

_LANES = 128
_MAX_BLK_ROWS = 8192          # 8192 x 128 x 4 B = 4 MiB per f32 input block
_VMEM_LIMIT = 48 * 1024 * 1024  # covers 2 inputs x 2 buffers x 4 MiB + margin


def _num_tensorcores() -> int:
    """2-way outer split only where there really are 2 TensorCores (v7x)."""
    try:
        kind = jax.devices()[0].device_kind.lower()
    except Exception:  # pragma: no cover
        return 1
    # TODO(synk): verify "parallel" actually shards across the 2 TCs on v7x;
    # switch to pltpu.CORE_PARALLEL if a profile shows it does not.
    return 2 if "v7" in kind else 1


_NCORES = _num_tensorcores()


def _rmse_sums_kernel(*refs, blk_rows, acc_rows, rows_total, maybe_ragged,
                      need_diff):
    """Accumulate sum((t-p)^2) (and optionally sum(t-p)) into the resident
    (1, acc_rows, 128) output block(s) of the current outer grid index."""
    if need_diff:
        p_ref, t_ref, sq_ref, sd_ref = refs
    else:
        p_ref, t_ref, sq_ref = refs
        sd_ref = None

    k = pl.program_id(1)

    @pl.when(k == 0)
    def _init():
        sq_ref[...] = jnp.zeros_like(sq_ref)
        if sd_ref is not None:
            sd_ref[...] = jnp.zeros_like(sd_ref)

    p = p_ref[...].astype(jnp.float32)
    t = t_ref[...].astype(jnp.float32)

    def fold(v):
        # (blk_rows, 128) -> (acc_rows, 128) with lane-aligned VPU adds.
        # acc_rows is kept wide (up to 128) so there are acc_rows/8
        # independent vreg add chains (ILP) instead of one deep serial chain.
        if blk_rows == acc_rows:
            return v
        return v.reshape(-1, acc_rows, _LANES).sum(axis=0)

    def accumulate(mask):
        d = t - p
        if mask is not None:
            d = jnp.where(mask, d, 0.0)
        sq_ref[0] += fold(d * d)
        if sd_ref is not None:
            sd_ref[0] += fold(d)

    if maybe_ragged:
        blk = pl.program_id(0) * pl.num_programs(1) + k
        row0 = blk * blk_rows
        is_clean = row0 + blk_rows <= rows_total

        @pl.when(is_clean)
        def _clean():
            accumulate(None)

        @pl.when(jnp.logical_not(is_clean))
        def _tail():
            rows = row0 + lax.broadcasted_iota(jnp.int32, (blk_rows, _LANES), 0)
            accumulate(rows < rows_total)
    else:
        accumulate(None)


def _partial_sums(p2, t2, need_diff, ncores):
    """p2, t2: (R, 128).  Returns (sum_sq_partials, sum_d_partials | None),
    each of shape (ncores, acc_rows, 128) float32."""
    r = p2.shape[0]
    if r >= 8:
        blk_rows = min(_MAX_BLK_ROWS, (r // 8) * 8)   # multiple of 8, <= R
    else:
        blk_rows = r                                   # tiny input: block == array

    # Widest accumulator (<=128 rows) that divides the block: gives the fold
    # several independent add chains instead of one serial one.
    acc_rows = blk_rows
    for cand in (128, 64, 32, 16, 8):
        if blk_rows % cand == 0:
            acc_rows = cand
            break

    nb = pl.cdiv(r, blk_rows)             # row-blocks actually backed by data
    ncores = max(1, min(ncores, nb))      # never more cores than real blocks
    k_inner = pl.cdiv(nb, ncores)         # row-blocks per core
    maybe_ragged = (ncores * k_inner * blk_rows) != r

    def in_map(o, k):
        # Logical blocks past the end are clamped onto the last real block;
        # their contribution is zeroed by the in-kernel row mask.
        return (jnp.minimum(o * k_inner + k, nb - 1), 0)

    kernel = functools.partial(
        _rmse_sums_kernel, blk_rows=blk_rows, acc_rows=acc_rows,
        rows_total=r, maybe_ragged=maybe_ragged, need_diff=need_diff)

    acc_sds = jax.ShapeDtypeStruct((ncores, acc_rows, _LANES), jnp.float32)
    acc_spec = pl.BlockSpec((1, acc_rows, _LANES), lambda o, k: (o, 0, 0))
    if need_diff:
        out_shape = (acc_sds, acc_sds)
        out_specs = [acc_spec, acc_spec]
    else:
        out_shape = acc_sds
        out_specs = acc_spec

    out = pl.pallas_call(
        kernel,
        out_shape=out_shape,
        grid_spec=pltpu.PrefetchScalarGridSpec(
            num_scalar_prefetch=0,
            grid=(ncores, k_inner),
            in_specs=[pl.BlockSpec((blk_rows, _LANES), in_map),
                      pl.BlockSpec((blk_rows, _LANES), in_map)],
            out_specs=out_specs,
        ),
        compiler_params=pltpu.CompilerParams(
            dimension_semantics=("parallel", "arbitrary"),
            vmem_limit_bytes=_VMEM_LIMIT),
    )(p2, t2)

    if need_diff:
        return out[0], out[1]
    return out, None


@functools.partial(jax.jit, static_argnames=("variance_penalty",))
def rmse_loss(output, target, variance_penalty=0.0):
    """JAX/Pallas equivalent of RMSELoss.forward."""
    n = output.size
    if n == 0:
        # torch: sqrt(mean of empty) -> NaN
        return jnp.float32(jnp.nan)

    use_penalty = (output.ndim > 0 and output.shape[0] > 1
                   and variance_penalty > 0.0)

    p = output.reshape(-1)
    t = target.reshape(-1)
    n_main = (n // _LANES) * _LANES
    rem = n - n_main

    sum_sq = jnp.float32(0.0)
    sum_d = jnp.float32(0.0)

    if n_main:
        if rem:
            p_main = lax.slice(p, (0,), (n_main,))
            t_main = lax.slice(t, (0,), (n_main,))
        else:
            p_main, t_main = p, t
        r = n_main // _LANES
        sq_p, sd_p = _partial_sums(p_main.reshape(r, _LANES),
                                   t_main.reshape(r, _LANES),
                                   need_diff=use_penalty,
                                   ncores=_NCORES)
        sum_sq = sum_sq + jnp.sum(sq_p)
        if use_penalty:
            sum_d = sum_d + jnp.sum(sd_p)

    if rem:
        # <128 trailing elements: fold into the scalar epilogue (no pad copy).
        d_tail = (lax.slice(t, (n_main,), (n,)).astype(jnp.float32)
                  - lax.slice(p, (n_main,), (n,)).astype(jnp.float32))
        sum_sq = sum_sq + jnp.sum(d_tail * d_tail)
        if use_penalty:
            sum_d = sum_d + jnp.sum(d_tail)

    # Tiny scalar epilogue in plain JAX.
    nf = jnp.float32(n)
    rmse = jnp.sqrt(sum_sq / nf)
    if not use_penalty:
        return rmse
    mean_d = sum_d / nf
    var = (sum_sq - nf * mean_d * mean_d) / (nf - 1.0)   # unbiased, as torch.std
    std = jnp.sqrt(jnp.maximum(var, 0.0))
    return rmse + jnp.float32(variance_penalty) * std


if __name__ == "__main__":
    import numpy as np

    def ref_loss(o, t, vp):
        o = np.asarray(o).astype(np.float64)
        t = np.asarray(t).astype(np.float64)
        d = t - o
        rmse = float(np.sqrt(np.mean(d * d)))
        if o.shape[0] <= 1 or vp <= 0.0:
            return rmse
        return rmse + vp * float(np.std(d, ddof=1))

    key = jax.random.PRNGKey(0)
    k1, k2, k3, k4, k5, k6 = jax.random.split(key, 6)

    # Case 1: (seq=16, batch=4, hidden=32) f32, default (no penalty) branch.
    out1 = jax.random.normal(k1, (16, 4, 32), dtype=jnp.float32)
    tgt1 = jax.random.normal(k2, (16, 4, 32), dtype=jnp.float32)
    l1 = jax.block_until_ready(rmse_loss(out1, tgt1, variance_penalty=0.0))
    assert abs(float(l1) - ref_loss(out1, tgt1, 0.0)) < 1e-4, float(l1)

    # Case 2: variance-penalty branch.
    l2 = jax.block_until_ready(rmse_loss(out1, tgt1, variance_penalty=0.3))
    assert abs(float(l2) - ref_loss(out1, tgt1, 0.3)) < 1e-4, float(l2)

    # Case 3: ragged 1-D input (333 elements, not a multiple of 128) —
    # lane-aligned prefix through the kernel, tail in the JAX epilogue.
    out3 = jax.random.normal(k3, (333,), dtype=jnp.float32)
    tgt3 = jax.random.normal(k4, (333,), dtype=jnp.float32)
    l3 = jax.block_until_ready(rmse_loss(out3, tgt3, variance_penalty=0.5))
    assert abs(float(l3) - ref_loss(out3, tgt3, 0.5)) < 1e-4, float(l3)

    # Case 4: bf16 inputs stay bf16 on the HBM side (cast happens in-kernel).
    out4 = out1.astype(jnp.bfloat16)
    tgt4 = tgt1.astype(jnp.bfloat16)
    l4 = jax.block_until_ready(rmse_loss(out4, tgt4, variance_penalty=0.0))
    assert abs(float(l4) - ref_loss(out4, tgt4, 0.0)) < 1e-3, float(l4)

    # Case 5: multi-block path with a ragged last row-block (300 rows of 128).
    out5 = jax.random.normal(k5, (300, 16, 8), dtype=jnp.float32)
    tgt5 = jax.random.normal(k6, (300, 16, 8), dtype=jnp.float32)
    l5 = jax.block_until_ready(rmse_loss(out5, tgt5, variance_penalty=0.2))
    assert abs(float(l5) - ref_loss(out5, tgt5, 0.2)) < 1e-4, float(l5)

    print("KERNEL_OK")
</pallas_src>

<mosaic_0001>
module attributes {stable_mosaic.version = 11 : i64} {
  func.func @_rmse_sums_kernel(%arg0: i32, %arg1: i32, %arg2: memref<16x128xf32, #tpu.memory_space<vmem>>, %arg3: memref<16x128xf32, #tpu.memory_space<vmem>>, %arg4: memref<1x16x128xf32, #tpu.memory_space<vmem>>) attributes {dimension_semantics = [#tpu.dimension_semantics<parallel>, #tpu.dimension_semantics<arbitrary>], iteration_bounds = array<i64: 1, 1>, scalar_prefetch = 0 : i64, scratch_operands = 0 : i64, tpu.core_type = #tpu.core_type<tc>, window_params = [{transform_indices = @transform_0, window_bounds = array<i64: 16, 128>}, {transform_indices = @transform_1, window_bounds = array<i64: 16, 128>}, {transform_indices = @transform_2, window_bounds = array<i64: 1, 16, 128>}]} {
    %c0_i32 = arith.constant 0 : i32
    %0 = arith.cmpi eq, %arg1, %c0_i32 : i32
    %1 = arith.extui %0 : i1 to i32
    %c0_i32_0 = arith.constant 0 : i32
    %2 = arith.cmpi ne, %1, %c0_i32_0 : i32
    scf.if %2 {
      %cst = arith.constant 0.000000e+00 : f32
      %13 = vector.broadcast %cst : f32 to vector<1x16x128xf32>
      %c0_10 = arith.constant 0 : index
      %c0_11 = arith.constant 0 : index
      %c0_12 = arith.constant 0 : index
      %14 = vector.load %arg4[%c0_10, %c0_11, %c0_12] : memref<1x16x128xf32, #tpu.memory_space<vmem>>, vector<1x16x128xf32>
      tpu.vector_store %arg4[%c0_10, %c0_11, %c0_12], %13 {strides = array<i32>} : memref<1x16x128xf32, #tpu.memory_space<vmem>>, vector<1x16x128xf32>,
    } else {
    }
    %c0 = arith.constant 0 : index
    %c0_1 = arith.constant 0 : index
    %3 = vector.load %arg2[%c0, %c0_1] : memref<16x128xf32, #tpu.memory_space<vmem>>, vector<16x128xf32>
    %c0_2 = arith.constant 0 : index
    %c0_3 = arith.constant 0 : index
    %4 = vector.load %arg3[%c0_2, %c0_3] : memref<16x128xf32, #tpu.memory_space<vmem>>, vector<16x128xf32>
    %5 = arith.subf %4, %3 : vector<16x128xf32>
    %c0_4 = arith.constant 0 : index
    %c0_5 = arith.constant 0 : index
    %c0_6 = arith.constant 0 : index
    %6 = vector.load %arg4[%c0_4, %c0_5, %c0_6] : memref<1x16x128xf32, #tpu.memory_space<vmem>>, vector<1x16x128xf32>
    %7 = vector.shape_cast %6 : vector<1x16x128xf32> to vector<16x128xf32>
    %8 = arith.mulf %5, %5 : vector<16x128xf32>
    %9 = arith.addf %7, %8 : vector<16x128xf32>
    %c0_7 = arith.constant 0 : index
    %c0_8 = arith.constant 0 : index
    %c0_9 = arith.constant 0 : index
    %10 = vector.load %arg4[%c0_7, %c0_8, %c0_9] : memref<1x16x128xf32, #tpu.memory_space<vmem>>, vector<1x16x128xf32>
    %11 = vector.shape_cast %10 : vector<1x16x128xf32> to vector<16x128xf32>
    %12 = vector.shape_cast %9 : vector<16x128xf32> to vector<1x16x128xf32>
    tpu.vector_store %arg4[%c0_7, %c0_8, %c0_9], %12 {strides = array<i32>} : memref<1x16x128xf32, #tpu.memory_space<vmem>>, vector<1x16x128xf32>,
    return
  }
  func.func @transform_0(%arg0: i32, %arg1: i32) -> (i32, i32) {
    %c1_i32 = arith.constant 1 : i32
    %0 = arith.muli %arg0, %c1_i32 : i32
    %1 = arith.addi %0, %arg1 : i32
    %c0_i32 = arith.constant 0 : i32
    %2 = arith.minsi %1, %c0_i32 : i32
    %c0_i32_0 = arith.constant 0 : i32
    %c0_i32_1 = arith.constant 0 : i32
    return %2, %c0_i32_0 : i32, i32
  }
  func.func @transform_1(%arg0: i32, %arg1: i32) -> (i32, i32) {
    %c1_i32 = arith.constant 1 : i32
    %0 = arith.muli %arg0, %c1_i32 : i32
    %1 = arith.addi %0, %arg1 : i32
    %c0_i32 = arith.constant 0 : i32
    %2 = arith.minsi %1, %c0_i32 : i32
    %c0_i32_0 = arith.constant 0 : i32
    %c0_i32_1 = arith.constant 0 : i32
    return %2, %c0_i32_0 : i32, i32
  }
  func.func @transform_2(%arg0: i32, %arg1: i32) -> (i32, i32, i32) {
    %c0_i32 = arith.constant 0 : i32
    %c0_i32_0 = arith.constant 0 : i32
    %c0_i32_1 = arith.constant 0 : i32
    return %arg0, %c0_i32, %c0_i32_0 : i32, i32, i32
  }
}

</mosaic_0001>

<bundles_post_ra>
// kernel: rmse_loss.1
= control target key start
LH: loop header
LB: loop body
LE: loop exit
PB: predicated region body
PF: predicated region fallthrough
CT: control target
= control target key end

     0   :  { %s145_s0 = inlined_call_operand.vmem [shape: f32[16,128], index: 0, kind: input, shape index: {}]   ;;  %s146_s1 = inlined_call_operand.vmem [shape: f32[16,128], index: 1, kind: input, shape index: {}]   ;;  %s147_s2 = inlined_call_operand.vmem [shape: f32[1,16,128], index: 2, kind: output, shape index: {}]  }
   0x1   :  { %v81_v0 = vld [vmem:[%s145_s0] sm:$0xff]  ;;  %v82_v2 = vld [vmem:[%s145_s0 + $0x8] sm:$0xff] }
   0x2   :  { %v83_v1 = vld [vmem:[%s146_s1] sm:$0xff]  ;;  %v84_v4 = vld [vmem:[%s146_s1 + $0x8] sm:$0xff] }
   0x3   :  { %v85_v3 = vsub.f32 %v83_v1, %v81_v0  ;;  %v86_v5 = vsub.f32 %v84_v4, %v82_v2 }
   0x5   :  { %v89_v6 = vmul.f32 %v85_v3, %v85_v3  ;;  %v90_v7 = vmul.f32 %v86_v5, %v86_v5 }
   0x7   :  { %93 = vst [vmem:[%s147_s2] sm:$0xff] %v89_v6  ;;  %94 = vst [vmem:[%s147_s2 + $0x8] sm:$0xff] %v90_v7 }

</bundles_post_ra>
